<compile_context>
chip_gen: v7x
topology: tpu7x:2x2x1
jax: 0.10.0
libtpu: 0.0.40
codegen_flags: <defaults>
</compile_context>

<pallas_src>
import jax
import jax.numpy as jnp
from jax.experimental import pallas as pl
from jax.experimental.pallas import tpu as pltpu


# ----------------------------- kernel ---------------------------------------


def decoder_kernel(z_ref, w1_ref, b1_ref, w2_ref, b2_ref, w3_ref, b3_ref, out_ref):
    # Layer 1: Linear + ReLU  (bf16 MXU matmul, f32 accumulate)
    z = z_ref[...].astype(jnp.bfloat16)
    h = jnp.dot(z, w1_ref[...], preferred_element_type=jnp.float32)
    h = jnp.maximum(h + b1_ref[...], 0.0)
    # Layer 2: Linear + ReLU
    h = jnp.dot(h.astype(jnp.bfloat16), w2_ref[...], preferred_element_type=jnp.float32)
    h = jnp.maximum(h + b2_ref[...], 0.0)
    # Layer 3: Linear + Sigmoid.  sigmoid(o) = 0.5 * tanh(0.5 * o) + 0.5:
    # a single EUP push (tanh) plus two cheap VPU ops, no overflow edge case.
    o = jnp.dot(h.astype(jnp.bfloat16), w3_ref[...], preferred_element_type=jnp.float32)
    o = o + b3_ref[...]
    out_ref[...] = (0.5 * jnp.tanh(0.5 * o) + 0.5).astype(out_ref.dtype)


# ----------------------------- helpers ---------------------------------------


def _round_up(x, m):
    return ((x + m - 1) // m) * m


def _num_tensorcores_per_chip():
    """2 on v7x (parallel grid axes are sharded across cores), else 1."""
    try:
        kind = jax.devices()[0].device_kind.lower()
    except Exception:
        return 1
    return 2 if "v7" in kind else 1


def _vmem_budget_bytes():
    """VMEM budget: ~60% of physical, capped at 48 MiB (safe on 64 MiB v7x)."""
    try:
        cap = int(pltpu.get_tpu_info().vmem_capacity_bytes)
    except Exception:
        cap = 64 * 1024 * 1024
    return min(int(cap * 0.6), 48 * 1024 * 1024)


def _choose_tiling(batch, bm_cap, num_cores):
    """Pick (bm, num_blocks).

    Single TC: one block as big as the budget allows (grid=1 when possible).
    Two TCs (v7x): an even number of blocks so both cores stay busy.
    """
    bm_cap = max(16, (bm_cap // 16) * 16)
    if num_cores <= 1 or batch <= 16:
        bm = min(bm_cap, _round_up(batch, 16))
        num_blocks = pl.cdiv(batch, bm)
    else:
        num_blocks = max(num_cores, pl.cdiv(batch, bm_cap))
        num_blocks = _round_up(num_blocks, num_cores)
        bm = _round_up(pl.cdiv(batch, num_blocks), 16)
    return bm, num_blocks


# ----------------------------- wrapper ---------------------------------------


def decoder_forward(z, params, out_size=None, *, bm=None):
    """z: (B, latent) f32 -> (B, out_size) f32."""
    w1, b1, w2, b2, w3, b3 = params
    B, latent = z.shape
    h1p, h2p, outp = w1.shape[1], w2.shape[1], w3.shape[1]
    if out_size is None:
        out_size = outp

    # VMEM footprint model (bytes):
    #   resident: bf16 weights + f32 biases (constant index maps)
    #   per batch row: double-buffered z tile (f32) + double-buffered output
    #   tile (f32) + f32/bf16 intermediate activations.
    resident_bytes = int((w1.size + w2.size + w3.size) * 2
                         + (b1.size + b2.size + b3.size) * 4)
    per_row_bytes = (2 * latent * 4            # z tile, double-buffered
                     + 2 * outp * 4            # output tile, double-buffered
                     + latent * 2              # bf16 copy of z
                     + (h1p + h2p) * (4 + 2)   # f32 intermediates + bf16 copies
                     + outp * 4)               # f32 pre-sigmoid accumulator
    budget = _vmem_budget_bytes()

    if bm is None:
        bm_cap = max(16, (budget - resident_bytes) // per_row_bytes)
        bm, num_blocks = _choose_tiling(B, int(bm_cap), _num_tensorcores_per_chip())
    else:
        num_blocks = pl.cdiv(B, bm)

    Bp = num_blocks * bm
    if Bp != B:
        z = jnp.pad(z, ((0, Bp - B), (0, 0)))

    resident = lambda shape: pl.BlockSpec(shape, lambda i: (0, 0))

    vmem_limit = min(budget,
                     int(resident_bytes + bm * per_row_bytes + (4 << 20)))

    out = pl.pallas_call(
        decoder_kernel,
        out_shape=jax.ShapeDtypeStruct((Bp, outp), jnp.float32),
        grid_spec=pl.GridSpec(
            grid=(num_blocks,),
            in_specs=[
                pl.BlockSpec((bm, latent), lambda i: (i, 0)),   # z tile (streamed)
                resident((latent, h1p)), resident((1, h1p)),    # W1, b1 (resident)
                resident((h1p, h2p)),    resident((1, h2p)),    # W2, b2
                resident((h2p, outp)),   resident((1, outp)),   # W3, b3
            ],
            out_specs=pl.BlockSpec((bm, outp), lambda i: (i, 0)),
        ),
        compiler_params=pltpu.CompilerParams(
            dimension_semantics=("parallel",),
            vmem_limit_bytes=vmem_limit,
        ),
    )(z, w1, b1, w2, b2, w3, b3)

    return out[:B, :out_size]


# ----------------------------- params ----------------------------------------


def init_decoder_params(key, latent_size, out_size):
    """Synthetic init matching nn.Linear shapes, stored transposed (in, out), f32."""
    h1 = out_size // 4
    h2 = out_size // 2
    dims = [(latent_size, h1), (h1, h2), (h2, out_size)]
    params = []
    for fan_in, fan_out in dims:
        kw, kb, key = jax.random.split(key, 3)
        bound = 1.0 / jnp.sqrt(fan_in)
        w = jax.random.uniform(kw, (fan_in, fan_out), jnp.float32, -bound, bound)
        b = jax.random.uniform(kb, (1, fan_out), jnp.float32, -bound, bound)
        params += [w, b]
    return tuple(params)


def pack_decoder_params(params_f32):
    """Pad hidden AND output dims to multiples of 128 lanes; weights -> bf16.

    Padding is mathematically inert: padded W1/W2 columns and b1/b2 entries are
    zero, so padded hidden activations are relu(0)=0, and the padded W2/W3 rows
    they multiply contribute nothing.  Padded W3 columns / b3 entries produce
    sigmoid(0)=0.5 in padded output columns, which are sliced off in the
    wrapper.  The 128-padded output keeps the writeback lane-dense (unmasked
    vst, no ragged output DMA).
    """
    w1, b1, w2, b2, w3, b3 = params_f32
    h1, h2, out_size = w1.shape[1], w2.shape[1], w3.shape[1]
    h1p = _round_up(h1, 128)
    h2p = _round_up(h2, 128)
    outp = _round_up(out_size, 128)
    w1p = jnp.pad(w1, ((0, 0), (0, h1p - h1))).astype(jnp.bfloat16)
    b1p = jnp.pad(b1, ((0, 0), (0, h1p - h1)))
    w2p = jnp.pad(w2, ((0, h1p - h1), (0, h2p - h2))).astype(jnp.bfloat16)
    b2p = jnp.pad(b2, ((0, 0), (0, h2p - h2)))
    w3p = jnp.pad(w3, ((0, h2p - h2), (0, outp - out_size))).astype(jnp.bfloat16)
    b3p = jnp.pad(b3, ((0, 0), (0, outp - out_size)))
    return (w1p, b1p, w2p, b2p, w3p, b3p)


def decoder_reference(z, params_f32):
    w1, b1, w2, b2, w3, b3 = params_f32
    h = jax.nn.relu(z @ w1 + b1)
    h = jax.nn.relu(h @ w2 + b2)
    return jax.nn.sigmoid(h @ w3 + b3)


# ----------------------------- demo -------------------------------------------


if __name__ == "__main__":
    latent_size = 32
    out_size = 128   # -> hidden sizes 32 and 64, padded to 128 lanes in-kernel
    batch = 64

    key = jax.random.PRNGKey(0)
    kz, kp = jax.random.split(key)
    z = jax.random.normal(kz, (batch, latent_size), jnp.float32)

    params_f32 = init_decoder_params(kp, latent_size, out_size)
    params = pack_decoder_params(params_f32)

    w = decoder_forward(z, params, out_size)
    w = jax.block_until_ready(w)

    w_ref = decoder_reference(z, params_f32)
    assert w.shape == (batch, out_size)
    # bf16 matmul inputs -> loosened tolerance vs f32 reference.
    assert jnp.allclose(w, w_ref, atol=2e-2, rtol=2e-2), float(
        jnp.max(jnp.abs(w - w_ref))
    )

    print("KERNEL_OK")
</pallas_src>

<mosaic_0001>
module attributes {stable_mosaic.version = 11 : i64} {
  func.func @decoder_kernel(%arg0: i32, %arg1: memref<64x32xf32, #tpu.memory_space<vmem>>, %arg2: memref<32x128xbf16, #tpu.memory_space<vmem>>, %arg3: memref<1x128xf32, #tpu.memory_space<vmem>>, %arg4: memref<128x128xbf16, #tpu.memory_space<vmem>>, %arg5: memref<1x128xf32, #tpu.memory_space<vmem>>, %arg6: memref<128x128xbf16, #tpu.memory_space<vmem>>, %arg7: memref<1x128xf32, #tpu.memory_space<vmem>>, %arg8: memref<64x128xf32, #tpu.memory_space<vmem>>) attributes {dimension_semantics = [#tpu.dimension_semantics<parallel>], iteration_bounds = array<i64: 1>, scalar_prefetch = 0 : i64, scratch_operands = 0 : i64, tpu.core_type = #tpu.core_type<tc>, window_params = [{transform_indices = @transform_0, window_bounds = array<i64: 64, 32>}, {pipeline_mode = #tpu.pipeline_mode<synchronous>, transform_indices = @transform_1, window_bounds = array<i64: 32, 128>}, {pipeline_mode = #tpu.pipeline_mode<synchronous>, transform_indices = @transform_2, window_bounds = array<i64: 1, 128>}, {pipeline_mode = #tpu.pipeline_mode<synchronous>, transform_indices = @transform_3, window_bounds = array<i64: 128, 128>}, {pipeline_mode = #tpu.pipeline_mode<synchronous>, transform_indices = @transform_4, window_bounds = array<i64: 1, 128>}, {pipeline_mode = #tpu.pipeline_mode<synchronous>, transform_indices = @transform_5, window_bounds = array<i64: 128, 128>}, {pipeline_mode = #tpu.pipeline_mode<synchronous>, transform_indices = @transform_6, window_bounds = array<i64: 1, 128>}, {transform_indices = @transform_7, window_bounds = array<i64: 64, 128>}]} {
    %c0 = arith.constant 0 : index
    %c0_0 = arith.constant 0 : index
    %0 = vector.load %arg1[%c0, %c0_0] : memref<64x32xf32, #tpu.memory_space<vmem>>, vector<64x32xf32>
    %1 = arith.truncf %0 : vector<64x32xf32> to vector<64x32xbf16>
    %c0_1 = arith.constant 0 : index
    %c0_2 = arith.constant 0 : index
    %2 = vector.load %arg2[%c0_1, %c0_2] : memref<32x128xbf16, #tpu.memory_space<vmem>>, vector<32x128xbf16>
    %cst = arith.constant dense<0.000000e+00> : vector<64x128xf32>
    %3 = tpu.matmul %1, %2, %cst {dimension_numbers = #tpu.dot_dimension_numbers<[1], [0], [0], [1], [0, 0, 1, 1], [], []>} : vector<64x32xbf16>, vector<32x128xbf16>, vector<64x128xf32> -> vector<64x128xf32>
    %c0_3 = arith.constant 0 : index
    %c0_4 = arith.constant 0 : index
    %4 = vector.load %arg3[%c0_3, %c0_4] : memref<1x128xf32, #tpu.memory_space<vmem>>, vector<1x128xf32>
    %5 = vector.broadcast %4 : vector<1x128xf32> to vector<64x128xf32>
    %6 = arith.addf %3, %5 : vector<64x128xf32>
    %cst_5 = arith.constant 0.000000e+00 : f32
    %7 = vector.broadcast %cst_5 : f32 to vector<64x128xf32>
    %8 = arith.maximumf %6, %7 : vector<64x128xf32>
    %9 = arith.truncf %8 : vector<64x128xf32> to vector<64x128xbf16>
    %c0_6 = arith.constant 0 : index
    %c0_7 = arith.constant 0 : index
    %10 = vector.load %arg4[%c0_6, %c0_7] : memref<128x128xbf16, #tpu.memory_space<vmem>>, vector<128x128xbf16>
    %cst_8 = arith.constant dense<0.000000e+00> : vector<64x128xf32>
    %11 = tpu.matmul %9, %10, %cst_8 {dimension_numbers = #tpu.dot_dimension_numbers<[1], [0], [0], [1], [0, 0, 1, 1], [], []>} : vector<64x128xbf16>, vector<128x128xbf16>, vector<64x128xf32> -> vector<64x128xf32>
    %c0_9 = arith.constant 0 : index
    %c0_10 = arith.constant 0 : index
    %12 = vector.load %arg5[%c0_9, %c0_10] : memref<1x128xf32, #tpu.memory_space<vmem>>, vector<1x128xf32>
    %13 = vector.broadcast %12 : vector<1x128xf32> to vector<64x128xf32>
    %14 = arith.addf %11, %13 : vector<64x128xf32>
    %cst_11 = arith.constant 0.000000e+00 : f32
    %15 = vector.broadcast %cst_11 : f32 to vector<64x128xf32>
    %16 = arith.maximumf %14, %15 : vector<64x128xf32>
    %17 = arith.truncf %16 : vector<64x128xf32> to vector<64x128xbf16>
    %c0_12 = arith.constant 0 : index
    %c0_13 = arith.constant 0 : index
    %18 = vector.load %arg6[%c0_12, %c0_13] : memref<128x128xbf16, #tpu.memory_space<vmem>>, vector<128x128xbf16>
    %cst_14 = arith.constant dense<0.000000e+00> : vector<64x128xf32>
    %19 = tpu.matmul %17, %18, %cst_14 {dimension_numbers = #tpu.dot_dimension_numbers<[1], [0], [0], [1], [0, 0, 1, 1], [], []>} : vector<64x128xbf16>, vector<128x128xbf16>, vector<64x128xf32> -> vector<64x128xf32>
    %c0_15 = arith.constant 0 : index
    %c0_16 = arith.constant 0 : index
    %20 = vector.load %arg7[%c0_15, %c0_16] : memref<1x128xf32, #tpu.memory_space<vmem>>, vector<1x128xf32>
    %21 = vector.broadcast %20 : vector<1x128xf32> to vector<64x128xf32>
    %22 = arith.addf %19, %21 : vector<64x128xf32>
    %cst_17 = arith.constant 5.000000e-01 : f32
    %23 = vector.broadcast %cst_17 : f32 to vector<64x128xf32>
    %24 = arith.mulf %23, %22 : vector<64x128xf32>
    %25 = math.tanh %24 : vector<64x128xf32>
    %cst_18 = arith.constant 5.000000e-01 : f32
    %26 = vector.broadcast %cst_18 : f32 to vector<64x128xf32>
    %27 = arith.mulf %26, %25 : vector<64x128xf32>
    %cst_19 = arith.constant 5.000000e-01 : f32
    %28 = vector.broadcast %cst_19 : f32 to vector<64x128xf32>
    %29 = arith.addf %27, %28 : vector<64x128xf32>
    %c0_20 = arith.constant 0 : index
    %c0_21 = arith.constant 0 : index
    %30 = vector.load %arg8[%c0_20, %c0_21] : memref<64x128xf32, #tpu.memory_space<vmem>>, vector<64x128xf32>
    tpu.vector_store %arg8[%c0_20, %c0_21], %29 {strides = array<i32>} : memref<64x128xf32, #tpu.memory_space<vmem>>, vector<64x128xf32>,
    return
  }
  func.func @transform_0(%arg0: i32) -> (i32, i32) {
    %c0_i32 = arith.constant 0 : i32
    %c0_i32_0 = arith.constant 0 : i32
    return %arg0, %c0_i32 : i32, i32
  }
  func.func @transform_1(%arg0: i32) -> (i32, i32) {
    %c0_i32 = arith.constant 0 : i32
    %c0_i32_0 = arith.constant 0 : i32
    %c0_i32_1 = arith.constant 0 : i32
    return %c0_i32, %c0_i32_0 : i32, i32
  }
  func.func @transform_2(%arg0: i32) -> (i32, i32) {
    %c0_i32 = arith.constant 0 : i32
    %c0_i32_0 = arith.constant 0 : i32
    %c0_i32_1 = arith.constant 0 : i32
    return %c0_i32, %c0_i32_0 : i32, i32
  }
  func.func @transform_3(%arg0: i32) -> (i32, i32) {
    %c0_i32 = arith.constant 0 : i32
    %c0_i32_0 = arith.constant 0 : i32
    %c0_i32_1 = arith.constant 0 : i32
    return %c0_i32, %c0_i32_0 : i32, i32
  }
  func.func @transform_4(%arg0: i32) -> (i32, i32) {
    %c0_i32 = arith.constant 0 : i32
    %c0_i32_0 = arith.constant 0 : i32
    %c0_i32_1 = arith.constant 0 : i32
    return %c0_i32, %c0_i32_0 : i32, i32
  }
  func.func @transform_5(%arg0: i32) -> (i32, i32) {
    %c0_i32 = arith.constant 0 : i32
    %c0_i32_0 = arith.constant 0 : i32
    %c0_i32_1 = arith.constant 0 : i32
    return %c0_i32, %c0_i32_0 : i32, i32
  }
  func.func @transform_6(%arg0: i32) -> (i32, i32) {
    %c0_i32 = arith.constant 0 : i32
    %c0_i32_0 = arith.constant 0 : i32
    %c0_i32_1 = arith.constant 0 : i32
    return %c0_i32, %c0_i32_0 : i32, i32
  }
  func.func @transform_7(%arg0: i32) -> (i32, i32) {
    %c0_i32 = arith.constant 0 : i32
    %c0_i32_0 = arith.constant 0 : i32
    return %arg0, %c0_i32 : i32, i32
  }
}

</mosaic_0001>

<bundles_post_ra>
// kernel: tpu_custom_call.1
= control target key start
LH: loop header
LB: loop body
LE: loop exit
PB: predicated region body
PF: predicated region fallthrough
CT: control target
= control target key end

     0   :  { %12 = vsyncpa [#allocation3], 0  ;;  %s848_s0 = inlined_call_operand.vmem [shape: f32[64,32], index: 0, kind: input, shape index: {}]   ;;  %s849_s1 = inlined_call_operand.vmem [shape: bf16[32,128], index: 1, kind: input, shape index: {}]   ;;  %s850_s2 = inlined_call_operand.vmem [shape: f32[1,128], index: 2, kind: input, shape index: {}]   ;;  %s851_s3 = inlined_call_operand.vmem [shape: bf16[128,128], index: 3, kind: input, shape index: {}]   ;;  %s852_s4 = inlined_call_operand.vmem [shape: f32[1,128], index: 4, kind: input, shape index: {}]   ;;  %s853_s5 = inlined_call_operand.hbm [shape: bf16[128,128], index: 5, kind: input, shape index: {}]   ;;  %s854_s6 = inlined_call_operand.vmem [shape: f32[1,128], index: 6, kind: input, shape index: {}]   ;;  %s855_s7 = inlined_call_operand.hbm [shape: f32[64,128], index: 7, kind: output, shape index: {}]  }
   0x1   :  { %13 = vsyncpa [#allocation4], 0  ;;  %s711_s24 = smov [#allocation2]   ;;  %s663_s28 = scalar_lea.hbm %s853_s5, 1024 }
   0x2   :  { %s29_s25 = sshll.u32 %s711_s24, 4  ;;  %p664_p0 = scmp.ne.s32.totalorder %s853_s5, %s663_s28  ;;  %s30_s25 = int_to_ptr.vmem [resolvable:$true] %s29_s25 }
   0x3   :  { %p667_p1 = scmp.lt.u32.totalorder %s663_s28, %s853_s5 }
   0x5   :  { %p669_p2 = pnand %p667_p1, %p664_p0 }
   0x7   :  { %672 = shalt.err (!%p669_p2)
}
   0x8   :  { %s673_s10 = scalar_lea.vmem %s30_s25, 1024  ;;  %p678_p4 = scmp.lt.s32.totalorder %s30_s25, %s30_s25 }
   0x9   :  { %p674_p3 = scmp.ne.s32.totalorder %s30_s25, %s673_s10  ;;  %p679_p5 = scmp.lt.s32.totalorder %s673_s10, %s673_s10 }
   0xb   :  { %p680_p6 = por %p679_p5, %p678_p4 }
   0xd   :  { %p681_p7 = pnand %p680_p6, %p674_p3 }
   0xf   :  { %684 = shalt.err (!%p681_p7)
}
  0x10   :  { %s712_s11 = smov 64   ;;  %s713_s12 = smov 4  }
  0x11   :  { %35 = dma.hbm_to_vmem [thread:$0]  %s853_s5, 1024, %s30_s25, [#allocation3], %s712_s11, %s712_s11, %s713_s12  }
  0x12   :  { %707 = dma.done.wait [#allocation3], 1024  }
  0x13   :  { %708 = vsyncadd [#allocation3], 4294966272  ;;  %v629_v0 = vld [vmem:[%s849_s1] sm:$0xff]   ;;  %v630_v1 = vld [vmem:[%s849_s1 + $0x8] sm:$0xff]   ;;  %vm77_vm0 = vcmask 261120  }
  0x14   :  { %563 = vmatprep.subr.bf16.mxu0 %v629_v0  ;;  %v42_v2 = vld [vmem:[%s848_s0] sm:$0xff]  ;;  %v43_v3 = vld [vmem:[%s848_s0 + $0x8] sm:$0xff]  ;;  %v44_v5 = vld [vmem:[%s848_s0 + $0x10] sm:$0xff] }
  0x15   :  { %564 = vmatpush3.bf16.msra.mxu0 %v629_v0  ;;  %v50_v4 = vpack.c.bf16 %v43_v3, %v42_v2  ;;  %v45_v6 = vld [vmem:[%s848_s0 + $0x18] sm:$0xff]  ;;  %v46_v7 = vld [vmem:[%s848_s0 + $0x20] sm:$0xff]  ;;  %v47_v8 = vld [vmem:[%s848_s0 + $0x28] sm:$0xff] }
  0x16   :  { %565 = vmatprep.subr.bf16.mxu0 %v630_v1  ;;  %v631_v9 = vld [vmem:[%s851_s3] sm:$0xff]   ;;  %v51_v10 = vpack.c.bf16 %v45_v6, %v44_v5  ;;  %v632_v11 = vld [vmem:[%s851_s3 + $0x8] sm:$0xff]   ;;  %v52_v12 = vpack.c.bf16 %v47_v8, %v46_v7  ;;  %v48_v13 = vld [vmem:[%s848_s0 + $0x30] sm:$0xff] }
  0x17   :  { %567 = vmatprep.mubr.msk.bf16.mxu0 %vm77_vm0, %v50_v4  ;;  %575 = vmatprep.subr.bf16.mxu1 %v631_v9  ;;  %v633_v14 = vld [vmem:[%s851_s3 + $0x10] sm:$0xff]   ;;  %v49_v15 = vld [vmem:[%s848_s0 + $0x38] sm:$0xff]  ;;  %v635_v18 = vld [vmem:[%s851_s3 + $0x20] sm:$0xff]  }
  0x18   :  { %576 = vmatpush3.bf16.msra.mxu1 %v631_v9  ;;  %v634_v16 = vld [vmem:[%s851_s3 + $0x18] sm:$0xff]   ;;  %v53_v17 = vpack.c.bf16 %v49_v15, %v48_v13  ;;  %v636_v19 = vld [vmem:[%s851_s3 + $0x28] sm:$0xff]   ;;  %v637_v20 = vld [vmem:[%s851_s3 + $0x30] sm:$0xff]  }
  0x19   :  { %566 = vmatpush3.bf16.msra.mxu0 %v630_v1  ;;  %577 = vmatprep.subr.bf16.mxu1 %v632_v11  ;;  %v638_v21 = vld [vmem:[%s851_s3 + $0x38] sm:$0xff]   ;;  %v639_v22 = vld [vmem:[#allocation2] sm:$0xff]   ;;  %v640_v23 = vld [vmem:[#allocation2 + $0x8] sm:$0xff]  }
  0x1a   :  { %599 = vmatprep.subr.bf16.mxu0 %v639_v22  ;;  %v641_v24 = vld [vmem:[#allocation2 + $0x10] sm:$0xff]   ;;  %v642_v25 = vld [vmem:[#allocation2 + $0x18] sm:$0xff]   ;;  %v643_v26 = vld [vmem:[#allocation2 + $0x20] sm:$0xff]  }
  0x1b   :  { %v644_v27 = vld [vmem:[#allocation2 + $0x28] sm:$0xff]   ;;  %v508_v28 = vld [vmem:[%s850_s2] ss:$0 sm:$0xff]  ;;  %v645_v57 = vld [vmem:[#allocation2 + $0x30] sm:$0xff]  }
  0x1c   :  { %568 = vmatmul.mubr.msk.bf16.vlgmr.msra.gmra.mrb[0].mxu0 %vm77_vm0, %v51_v10  ;;  %578 = vmatpush3.bf16.msra.mxu1 %v632_v11  ;;  %v646_v58 = vld [vmem:[#allocation2 + $0x38] sm:$0xff]   ;;  %v515_v59 = vld [vmem:[%s852_s4] ss:$0 sm:$0xff] }
  0x1d   :  { %571 = vmatprep.mubr.msk.bf16.mxu0 %vm77_vm0, %v52_v12  ;;  %579 = vmatprep.subr.bf16.mxu1 %v633_v14 }
  0x1e   :  { %600 = vmatpush3.bf16.msra.mxu0 %v639_v22 }
  0x1f   :  { %601 = vmatprep.subr.bf16.mxu0 %v640_v23 }
  0x20   :  { %580 = vmatpush3.bf16.msra.mxu1 %v633_v14 }
  0x21   :  { %581 = vmatprep.subr.bf16.mxu1 %v634_v16 }
  0x22   :  { %602 = vmatpush3.bf16.msra.mxu0 %v640_v23 }
  0x23   :  { %603 = vmatprep.subr.bf16.mxu0 %v641_v24 }
  0x24   :  { %572 = vmatmul.mubr.msk.bf16.gmra.mrb[4].mxu0 %vm77_vm0, %v53_v17  ;;  %582 = vmatpush3.bf16.msra.mxu1 %v634_v16 }
  0x25   :  { %583 = vmatprep.subr.bf16.mxu1 %v635_v18 }
  0x26   :  { %604 = vmatpush3.bf16.msra.mxu0 %v641_v24  ;;  %v524_v24 = vld [vmem:[%s854_s6] ss:$0 sm:$0xff]  ;;  %s714_s6 = smov [#allocation5]  }
  0x27   :  { %605 = vmatprep.subr.bf16.mxu0 %v642_v25  ;;  %s496_s26 = sshll.u32 %s714_s6, 4  ;;  %s497_s26 = int_to_ptr.vmem [resolvable:$true] %s496_s26 }
  0x28   :  { %584 = vmatpush3.bf16.msra.mxu1 %v635_v18  ;;  %s685_s27 = scalar_lea.vmem %s497_s26, 1024  ;;  %p690_p9 = scmp.lt.s32.totalorder %s497_s26, %s497_s26 }
  0x29   :  { %585 = vmatprep.subr.bf16.mxu1 %v636_v19  ;;  %p686_p8 = scmp.ne.s32.totalorder %s497_s26, %s685_s27  ;;  %p691_p10 = scmp.lt.s32.totalorder %s685_s27, %s685_s27 }
  0x2a   :  { %606 = vmatpush3.bf16.msra.mxu0 %v642_v25 }
  0x2b   :  { %607 = vmatprep.subr.bf16.mxu0 %v643_v26  ;;  %p692_p11 = por %p691_p10, %p690_p9 }
  0x2c   :  { %586 = vmatpush3.bf16.msra.mxu1 %v636_v19 }
  0x2d   :  { %587 = vmatprep.subr.bf16.mxu1 %v637_v20  ;;  %p693_p12 = pnand %p692_p11, %p686_p8 }
  0x2e   :  { %608 = vmatpush3.bf16.msra.mxu0 %v643_v26 }
  0x2f   :  { %609 = vmatprep.subr.bf16.mxu0 %v644_v27 }
  0x30   :  { %588 = vmatpush3.bf16.msra.mxu1 %v637_v20 }
  0x31   :  { %589 = vmatprep.subr.bf16.mxu1 %v638_v21 }
  0x32   :  { %610 = vmatpush3.bf16.msra.mxu0 %v644_v27 }
  0x33   :  { %611 = vmatprep.subr.bf16.mxu0 %v645_v57 }
  0x34   :  { %590 = vmatpush3.bf16.msra.mxu1 %v638_v21 }
  0x36   :  { %612 = vmatpush3.bf16.msra.mxu0 %v645_v57 }
  0x37   :  { %613 = vmatprep.subr.bf16.mxu0 %v646_v58 }
  0x3a   :  { %614 = vmatpush3.bf16.msra.mxu0 %v646_v58 }
  0xef   :  { %v569_v29 = vpop.f32.mrb[0].mxu0 }
  0xf0   :  { %v133_v30 = vadd.f32 %v569_v29, %v508_v28  ;;  %v124_v31 = vpop.f32.mrb[1].mxu0 }
  0xf1   :  { %v125_v32 = vadd.f32 %v508_v28, %v124_v31  ;;  %v570_v33 = vpop.f32.mrb[2].mxu0 }
  0xf2   :  { %v136_v34 = vadd.f32 %v570_v33, %v508_v28  ;;  %v127_v35 = vpop.f32.mrb[3].mxu0  ;;  %v157_v37 = vmax.f32 %v133_v30, 0.0 }
  0xf3   :  { %v128_v36 = vadd.f32 %v508_v28, %v127_v35  ;;  %v155_v39 = vmax.f32 %v125_v32, 0.0 }
  0xf4   :  { %v158_v38 = vmax.f32 %v136_v34, 0.0 }
  0xf5   :  { %v156_v40 = vmax.f32 %v128_v36, 0.0 }
  0xf6   :  { %v164_v41 = vpack.c.bf16 %v158_v38, %v157_v37 }
  0xf7   :  { %v573_v42 = vpop.f32.mrb[4].mxu0  ;;  %v163_v43 = vpack.c.bf16 %v156_v40, %v155_v39 }
  0xf8   :  { %v149_v44 = vadd.f32 %v573_v42, %v508_v28  ;;  %v140_v45 = vpop.f32.mrb[5].mxu0 }
  0xf9   :  { %v141_v46 = vadd.f32 %v508_v28, %v140_v45  ;;  %v574_v47 = vpop.f32.mrb[6].mxu0  ;;  %591 = vmatprep.mubr.bf16.mxu1 %v163_v43 }
  0xfa   :  { %v152_v48 = vadd.f32 %v574_v47, %v508_v28  ;;  %v143_v49 = vpop.f32.mrb[7].mxu0  ;;  %592 = vmatmul.mubr.bf16.vlgmr.msra.gmra.mrb[0].mxu1 %v164_v41  ;;  %v161_v51 = vmax.f32 %v149_v44, 0.0 }
  0xfb   :  { %v144_v50 = vadd.f32 %v508_v28, %v143_v49  ;;  %v159_v53 = vmax.f32 %v141_v46, 0.0 }
  0xfc   :  { %v162_v52 = vmax.f32 %v152_v48, 0.0 }
  0xfd   :  { %v160_v54 = vmax.f32 %v144_v50, 0.0 }
  0xfe   :  { %v166_v55 = vpack.c.bf16 %v162_v52, %v161_v51 }
  0xff   :  { %v165_v56 = vpack.c.bf16 %v160_v54, %v159_v53 }
 0x101   :  { %595 = vmatprep.mubr.bf16.mxu1 %v165_v56 }
 0x102   :  { %596 = vmatmul.mubr.bf16.gmra.mrb[4].mxu1 %v166_v55 }
 0x1cd   :  { %v593_v60 = vpop.f32.mrb[0].mxu1 }
 0x1ce   :  { %v281_v61 = vadd.f32 %v593_v60, %v515_v59  ;;  %v272_v62 = vpop.f32.mrb[1].mxu1 }
 0x1cf   :  { %v273_v63 = vadd.f32 %v515_v59, %v272_v62  ;;  %v594_v0 = vpop.f32.mrb[2].mxu1 }
 0x1d0   :  { %v284_v1 = vadd.f32 %v594_v0, %v515_v59  ;;  %v275_v2 = vpop.f32.mrb[3].mxu1  ;;  %v305_v4 = vmax.f32 %v281_v61, 0.0 }
 0x1d1   :  { %v276_v3 = vadd.f32 %v515_v59, %v275_v2  ;;  %v303_v6 = vmax.f32 %v273_v63, 0.0 }
 0x1d2   :  { %v306_v5 = vmax.f32 %v284_v1, 0.0 }
 0x1d3   :  { %v304_v7 = vmax.f32 %v276_v3, 0.0 }
 0x1d4   :  { %v312_v8 = vpack.c.bf16 %v306_v5, %v305_v4 }
 0x1d5   :  { %v311_v9 = vpack.c.bf16 %v304_v7, %v303_v6  ;;  %v597_v10 = vpop.f32.mrb[4].mxu1 }
 0x1d6   :  { %v297_v11 = vadd.f32 %v597_v10, %v515_v59  ;;  %v288_v12 = vpop.f32.mrb[5].mxu1 }
 0x1d7   :  { %v289_v13 = vadd.f32 %v515_v59, %v288_v12  ;;  %v598_v14 = vpop.f32.mrb[6].mxu1  ;;  %615 = vmatprep.mubr.bf16.mxu0 %v311_v9 }
 0x1d8   :  { %v300_v15 = vadd.f32 %v598_v14, %v515_v59  ;;  %v291_v16 = vpop.f32.mrb[7].mxu1  ;;  %616 = vmatmul.mubr.bf16.vlgmr.msra.gmra.mrb[8].mxu0 %v312_v8  ;;  %v309_v18 = vmax.f32 %v297_v11, 0.0 }
 0x1d9   :  { %v292_v17 = vadd.f32 %v515_v59, %v291_v16  ;;  %v307_v20 = vmax.f32 %v289_v13, 0.0 }
 0x1da   :  { %v310_v19 = vmax.f32 %v300_v15, 0.0 }
 0x1db   :  { %v308_v21 = vmax.f32 %v292_v17, 0.0 }
 0x1dc   :  { %v314_v22 = vpack.c.bf16 %v310_v19, %v309_v18 }
 0x1dd   :  { %v313_v23 = vpack.c.bf16 %v308_v21, %v307_v20 }
 0x1df   :  { %619 = vmatprep.mubr.bf16.mxu0 %v313_v23 }
 0x1e0   :  { %620 = vmatmul.mubr.bf16.gmra.mrb[12].mxu0 %v314_v22 }
 0x2ab   :  { %v617_v25 = vpop.f32.mrb[8].mxu0 }
 0x2ac   :  { %v429_v26 = vadd.f32 %v617_v25, %v524_v24  ;;  %v420_v27 = vpop.f32.mrb[9].mxu0 }
 0x2ad   :  { %v421_v28 = vadd.f32 %v524_v24, %v420_v27  ;;  %v618_v29 = vpop.f32.mrb[10].mxu0 }
 0x2ae   :  { %v453_v30 = vmul.f32 0.5, %v429_v26  ;;  %v432_v31 = vadd.f32 %v618_v29, %v524_v24  ;;  %v423_v32 = vpop.f32.mrb[11].mxu0 }
 0x2af   :  { %v451_v33 = vmul.f32 0.5, %v421_v28  ;;  %v424_v34 = vadd.f32 %v524_v24, %v423_v32 }
 0x2b0   :  { %647 = vtanh.f32 %v453_v30  ;;  %v454_v35 = vmul.f32 0.5, %v432_v31 }
 0x2b1   :  { %649 = vtanh.f32 %v451_v33  ;;  %v452_v36 = vmul.f32 0.5, %v424_v34 }
 0x2b2   :  { %651 = vtanh.f32 %v454_v35 }
 0x2b3   :  { %653 = vtanh.f32 %v452_v36  ;;  %v621_v37 = vpop.f32.mrb[12].mxu0 }
 0x2b4   :  { %v445_v38 = vadd.f32 %v621_v37, %v524_v24  ;;  %v436_v39 = vpop.f32.mrb[13].mxu0 }
 0x2b5   :  { %v437_v40 = vadd.f32 %v524_v24, %v436_v39  ;;  %v622_v41 = vpop.f32.mrb[14].mxu0 }
 0x2b6   :  { %v457_v42 = vmul.f32 0.5, %v445_v38  ;;  %v448_v43 = vadd.f32 %v622_v41, %v524_v24  ;;  %v439_v44 = vpop.f32.mrb[15].mxu0 }
 0x2b7   :  { %v455_v45 = vmul.f32 0.5, %v437_v40  ;;  %v440_v46 = vadd.f32 %v524_v24, %v439_v44 }
 0x2b8   :  { %655 = vtanh.f32 %v457_v42  ;;  %v458_v47 = vmul.f32 0.5, %v448_v43 }
 0x2b9   :  { %657 = vtanh.f32 %v455_v45  ;;  %v456_v48 = vmul.f32 0.5, %v440_v46 }
 0x2ba   :  { %v648_v49 = vpop.eup %647  ;;  %659 = vtanh.f32 %v458_v47 }
 0x2bb   :  { %v650_v50 = vpop.eup %649  ;;  %v469_v51 = vmul.f32 0.5, %v648_v49  ;;  %661 = vtanh.f32 %v456_v48 }
 0x2bc   :  { %v652_v52 = vpop.eup %651  ;;  %v467_v53 = vmul.f32 0.5, %v650_v50 }
 0x2bd   :  { %v654_v54 = vpop.eup %653  ;;  %v477_v55 = vadd.f32 0.5, %v469_v51  ;;  %v470_v56 = vmul.f32 0.5, %v652_v52 }
 0x2be   :  { %v475_v57 = vadd.f32 0.5, %v467_v53  ;;  %v468_v58 = vmul.f32 0.5, %v654_v54 }
 0x2bf   :  { %485 = vst [vmem:[#allocation5 + $0x10] sm:$0xff] %v477_v55  ;;  %v478_v59 = vadd.f32 0.5, %v470_v56 }
 0x2c0   :  { %483 = vst [vmem:[#allocation5] sm:$0xff] %v475_v57  ;;  %v476_v60 = vadd.f32 0.5, %v468_v58 }
 0x2c1   :  { %486 = vst [vmem:[#allocation5 + $0x18] sm:$0xff] %v478_v59 }
 0x2c2   :  { %v656_v61 = vpop.eup %655  ;;  %484 = vst [vmem:[#allocation5 + $0x8] sm:$0xff] %v476_v60 }
 0x2c3   :  { %v658_v62 = vpop.eup %657  ;;  %v473_v63 = vmul.f32 0.5, %v656_v61 }
 0x2c4   :  { %v660_v0 = vpop.eup %659  ;;  %v471_v1 = vmul.f32 0.5, %v658_v62 }
 0x2c5   :  { %v662_v2 = vpop.eup %661  ;;  %v481_v3 = vadd.f32 0.5, %v473_v63  ;;  %v474_v4 = vmul.f32 0.5, %v660_v0 }
 0x2c6   :  { %v479_v5 = vadd.f32 0.5, %v471_v1  ;;  %v472_v6 = vmul.f32 0.5, %v662_v2 }
 0x2c7   :  { %489 = vst [vmem:[#allocation5 + $0x30] sm:$0xff] %v481_v3  ;;  %v482_v7 = vadd.f32 0.5, %v474_v4 }
 0x2c8   :  { %487 = vst [vmem:[#allocation5 + $0x20] sm:$0xff] %v479_v5  ;;  %v480_v8 = vadd.f32 0.5, %v472_v6 }
 0x2c9   :  { %490 = vst [vmem:[#allocation5 + $0x38] sm:$0xff] %v482_v7 }
 0x2ca   :  { %488 = vst [vmem:[#allocation5 + $0x28] sm:$0xff] %v480_v8 }
 0x2cb   :  { %696 = shalt.err (!%p693_p12)
}
 0x2cc   :  { %s697_s30 = scalar_lea.hbm %s855_s7, 1024 }
 0x2cd   :  { %p698_p13 = scmp.ne.s32.totalorder %s855_s7, %s697_s30  ;;  %p701_p0 = scmp.lt.u32.totalorder %s697_s30, %s855_s7 }
 0x2cf   :  { %p703_p1 = pnand %p701_p0, %p698_p13 }
 0x2d1   :  { %706 = shalt.err (!%p703_p1)
}
 0x2d2   :  { %s715_s12 = smov 128   ;;  %s716_s13 = smov 8  }
 0x2d3   :  { %502 = dma.vmem_to_hbm [thread:$0]  %s497_s26, 1024, %s855_s7, [#allocation4], %s715_s12, %s715_s12, %s716_s13  }
 0x2d4   :  { %709 = dma.done.wait [#allocation4], 1024  }
 0x2d5   :  { %710 = vsyncadd [#allocation4], 4294966272 }
 0x2d6   :  { %506 = vsyncpa [#allocation3], 1 }
 0x2d7   :  { %507 = vsyncpa [#allocation4], 1 }

</bundles_post_ra>
